<compile_context>
chip_gen: v7x
topology: tpu7x:2x2x1
jax: 0.10.0
libtpu: 0.0.40
codegen_flags: <defaults>
</compile_context>

<pallas_src>
import jax
import jax.numpy as jnp
from jax.experimental import pallas as pl
from jax.experimental.pallas import tpu as pltpu


def _choose_tile_i(n: int, d: int, bytes_per_elem: int = 4,
                   target_tile_bytes: int = 2 << 20) -> int:
    """Largest TI dividing N s.t. a (TI*N, D) tile stays under the soft target
    and the block's sublane dim respects the (8, 128) rule."""
    valid = []
    for ti in range(1, n + 1):
        if n % ti:
            continue
        rows = ti * n
        if ti < n and rows % 8 != 0:
            continue  # partial blocks must have sublane dim divisible by 8
        valid.append(ti)
    fitting = [ti for ti in valid
               if ti * n * d * bytes_per_elem <= target_tile_bytes]
    if fitting:
        return max(fitting)
    return min(valid)  # smallest legal tile (may exceed the soft target)


def _make_kernel(n: int, d: int, tile_i: int):
    rows = tile_i * n

    def kernel(h_ref, dis_ref, w12_ref, wet_ref, bias_ref, out_ref, *scratch):
        # h_ref:   (1, N, D)          dis_ref: (1, TI*N, D)  (i-major, j-minor rows)
        # w12_ref: (D, 2D) = [W1^T | W2^T]   wet_ref: (D, D) = We^T
        # bias_ref:(1, D)  = b1 + b2 + be    out_ref: (1, TI*N, D)
        h = h_ref[0]                        # (N, D)
        dis = dis_ref[0]                    # (TI*N, D)

        # Fused Hweight1 / Hweight2: one MXU matmul instead of two tiny ones.
        hw = jnp.dot(h, w12_ref[...], preferred_element_type=jnp.float32)  # (N, 2D)
        hw1 = hw[:, :d]                     # term indexed by j (static lane slice)

        if tile_i == n:
            hw2_t = hw[:, d:]               # term indexed by i (full range, static)
        else:
            # Dynamic i-range of this tile via a tiny VMEM scratch (ref-level ds).
            hw2_s = scratch[0]
            hw2_s[...] = hw[:, d:]
            i0 = pl.multiple_of(pl.program_id(1) * tile_i, tile_i)
            hw2_t = hw2_s[pl.ds(i0, tile_i), :]          # (TI, D)

        # Eweight1 on the flattened (i, j) rows.
        e = jnp.dot(dis, wet_ref[...], preferred_element_type=jnp.float32)  # (TI*N, D)

        # Broadcast terms expanded to row layout (row r -> i = r // N, j = r % N).
        hw1_rep = jnp.broadcast_to(hw1[None, :, :], (tile_i, n, d)).reshape(rows, d)
        hw2_rep = jnp.broadcast_to(hw2_t[:, None, :], (tile_i, n, d)).reshape(rows, d)

        out_ref[0] = (e + hw1_rep + hw2_rep + bias_ref[...]).astype(out_ref.dtype)

    return kernel


def edge_transition(h, dis_mat, w1, b1, w2, b2, we, be, *,
                    target_tile_bytes: int = 2 << 20):
    B, N, D = h.shape
    assert dis_mat.shape == (B, N, N, D)

    tile_i = _choose_tile_i(N, D, 4, target_tile_bytes)
    rows = tile_i * N
    n_tiles = N // tile_i

    # Hoist the weight transposes, fuse the two h-linears, fold the biases.
    w12 = jnp.concatenate([w1.T, w2.T], axis=1).astype(jnp.float32)   # (D, 2D)
    we_t = we.T.astype(jnp.float32)                                    # (D, D)
    bias = (b1 + b2 + be).reshape(1, D).astype(jnp.float32)            # (1, D)

    # Flatten the pair axes at the boundary (free in XLA, avoids in-kernel
    # ref reshapes) and un-flatten the result afterwards.
    dis2d = dis_mat.reshape(B, N * N, D)

    scratch_shapes = []
    if tile_i < N:
        scratch_shapes.append(pltpu.VMEM((N, D), jnp.float32))

    out2d = pl.pallas_call(
        _make_kernel(N, D, tile_i),
        out_shape=jax.ShapeDtypeStruct((B, N * N, D), jnp.float32),
        grid_spec=pltpu.PrefetchScalarGridSpec(
            num_scalar_prefetch=0,
            grid=(B, n_tiles),
            in_specs=[
                pl.BlockSpec((1, N, D), lambda b, ti: (b, 0, 0)),       # h (resident)
                pl.BlockSpec((1, rows, D), lambda b, ti: (b, ti, 0)),   # dis rows
                pl.BlockSpec((D, 2 * D), lambda b, ti: (0, 0)),         # [W1^T|W2^T]
                pl.BlockSpec((D, D), lambda b, ti: (0, 0)),             # We^T
                pl.BlockSpec((1, D), lambda b, ti: (0, 0)),             # fused bias
            ],
            out_specs=pl.BlockSpec((1, rows, D), lambda b, ti: (b, ti, 0)),
            scratch_shapes=scratch_shapes,
        ),
        compiler_params=pltpu.CompilerParams(
            dimension_semantics=("parallel", "parallel")),
    )(h, dis2d, w12, we_t, bias)

    return out2d.reshape(B, N, N, D)


def edge_transition_ref(h, dis_mat, w1, b1, w2, b2, we, be):
    # Plain-JAX reference matching the PyTorch forward.
    e = jnp.einsum("bijd,od->bijo", dis_mat, we) + be
    hw1 = jnp.einsum("bjd,od->bjo", h, w1) + b1   # broadcast over i (unsqueeze(1))
    hw2 = jnp.einsum("bid,od->bio", h, w2) + b2   # broadcast over j (unsqueeze(2))
    return e + hw1[:, None, :, :] + hw2[:, :, None, :]


if __name__ == "__main__":
    B, N, D = 2, 8, 32  # batch, num nodes, hidden_dim

    key = jax.random.PRNGKey(0)
    kh, kd, kw1, kb1, kw2, kb2, kwe, kbe = jax.random.split(key, 8)

    h = jax.random.normal(kh, (B, N, D), dtype=jnp.float32)
    dis_mat = jax.random.normal(kd, (B, N, N, D), dtype=jnp.float32)

    # nn.Linear(hidden_dim, hidden_dim) parameters: weight (D, D), bias (D,)
    scale = 1.0 / jnp.sqrt(D)
    w1 = jax.random.uniform(kw1, (D, D), jnp.float32, -scale, scale)
    b1 = jax.random.uniform(kb1, (D,), jnp.float32, -scale, scale)
    w2 = jax.random.uniform(kw2, (D, D), jnp.float32, -scale, scale)
    b2 = jax.random.uniform(kb2, (D,), jnp.float32, -scale, scale)
    we = jax.random.uniform(kwe, (D, D), jnp.float32, -scale, scale)
    be = jax.random.uniform(kbe, (D,), jnp.float32, -scale, scale)

    out = edge_transition(h, dis_mat, w1, b1, w2, b2, we, be)
    out = jax.block_until_ready(out)

    ref = edge_transition_ref(h, dis_mat, w1, b1, w2, b2, we, be)
    assert out.shape == (B, N, N, D)
    assert jnp.allclose(out, ref, atol=1e-5, rtol=1e-5), "mismatch vs reference"

    print("KERNEL_OK")
</pallas_src>

<mosaic_0001>
module attributes {stable_mosaic.version = 11 : i64} {
  func.func @kernel(%arg0: i32, %arg1: i32, %arg2: memref<1x8x32xf32, #tpu.memory_space<vmem>>, %arg3: memref<1x64x32xf32, #tpu.memory_space<vmem>>, %arg4: memref<32x64xf32, #tpu.memory_space<vmem>>, %arg5: memref<32x32xf32, #tpu.memory_space<vmem>>, %arg6: memref<1x32xf32, #tpu.memory_space<vmem>>, %arg7: memref<1x64x32xf32, #tpu.memory_space<vmem>>) attributes {dimension_semantics = [#tpu.dimension_semantics<parallel>, #tpu.dimension_semantics<parallel>], iteration_bounds = array<i64: 2, 1>, scalar_prefetch = 0 : i64, scratch_operands = 0 : i64, tpu.core_type = #tpu.core_type<tc>, window_params = [{transform_indices = @transform_0, window_bounds = array<i64: 1, 8, 32>}, {transform_indices = @transform_1, window_bounds = array<i64: 1, 64, 32>}, {pipeline_mode = #tpu.pipeline_mode<synchronous>, transform_indices = @transform_2, window_bounds = array<i64: 32, 64>}, {pipeline_mode = #tpu.pipeline_mode<synchronous>, transform_indices = @transform_3, window_bounds = array<i64: 32, 32>}, {pipeline_mode = #tpu.pipeline_mode<synchronous>, transform_indices = @transform_4, window_bounds = array<i64: 1, 32>}, {transform_indices = @transform_5, window_bounds = array<i64: 1, 64, 32>}]} {
    %c0 = arith.constant 0 : index
    %c0_0 = arith.constant 0 : index
    %c0_1 = arith.constant 0 : index
    %0 = vector.load %arg2[%c0, %c0_0, %c0_1] : memref<1x8x32xf32, #tpu.memory_space<vmem>>, vector<1x8x32xf32>
    %1 = vector.shape_cast %0 : vector<1x8x32xf32> to vector<8x32xf32>
    %c0_2 = arith.constant 0 : index
    %c0_3 = arith.constant 0 : index
    %c0_4 = arith.constant 0 : index
    %2 = vector.load %arg3[%c0_2, %c0_3, %c0_4] : memref<1x64x32xf32, #tpu.memory_space<vmem>>, vector<1x64x32xf32>
    %3 = vector.shape_cast %2 : vector<1x64x32xf32> to vector<64x32xf32>
    %c0_5 = arith.constant 0 : index
    %c0_6 = arith.constant 0 : index
    %4 = vector.load %arg4[%c0_5, %c0_6] : memref<32x64xf32, #tpu.memory_space<vmem>>, vector<32x64xf32>
    %cst = arith.constant dense<0.000000e+00> : vector<8x64xf32>
    %5 = tpu.matmul %1, %4, %cst {dimension_numbers = #tpu.dot_dimension_numbers<[1], [0], [0], [1], [0, 0, 1, 1], [], []>} : vector<8x32xf32>, vector<32x64xf32>, vector<8x64xf32> -> vector<8x64xf32>
    %6 = vector.extract_strided_slice %5 {offsets = [0, 0], sizes = [8, 32], strides = [1, 1]} : vector<8x64xf32> to vector<8x32xf32>
    %7 = vector.extract_strided_slice %5 {offsets = [0, 32], sizes = [8, 32], strides = [1, 1]} : vector<8x64xf32> to vector<8x32xf32>
    %c0_7 = arith.constant 0 : index
    %c0_8 = arith.constant 0 : index
    %8 = vector.load %arg5[%c0_7, %c0_8] : memref<32x32xf32, #tpu.memory_space<vmem>>, vector<32x32xf32>
    %cst_9 = arith.constant dense<0.000000e+00> : vector<64x32xf32>
    %9 = tpu.matmul %3, %8, %cst_9 {dimension_numbers = #tpu.dot_dimension_numbers<[1], [0], [0], [1], [0, 0, 1, 1], [], []>} : vector<64x32xf32>, vector<32x32xf32>, vector<64x32xf32> -> vector<64x32xf32>
    %10 = vector.shape_cast %6 : vector<8x32xf32> to vector<1x8x32xf32>
    %11 = vector.shape_cast %10 : vector<1x8x32xf32> to vector<1x8x32xf32>
    %12 = vector.broadcast %11 : vector<1x8x32xf32> to vector<8x8x32xf32>
    %13 = vector.shape_cast %12 : vector<8x8x32xf32> to vector<64x32xf32>
    %14 = vector.shape_cast %7 : vector<8x32xf32> to vector<8x1x32xf32>
    %15 = vector.shape_cast %14 : vector<8x1x32xf32> to vector<8x1x32xf32>
    %16 = vector.broadcast %15 : vector<8x1x32xf32> to vector<8x8x32xf32>
    %17 = vector.shape_cast %16 : vector<8x8x32xf32> to vector<64x32xf32>
    %18 = arith.addf %9, %13 : vector<64x32xf32>
    %19 = arith.addf %18, %17 : vector<64x32xf32>
    %c0_10 = arith.constant 0 : index
    %c0_11 = arith.constant 0 : index
    %20 = vector.load %arg6[%c0_10, %c0_11] : memref<1x32xf32, #tpu.memory_space<vmem>>, vector<1x32xf32>
    %21 = vector.broadcast %20 : vector<1x32xf32> to vector<64x32xf32>
    %22 = arith.addf %19, %21 : vector<64x32xf32>
    %c0_12 = arith.constant 0 : index
    %c0_13 = arith.constant 0 : index
    %c0_14 = arith.constant 0 : index
    %23 = vector.load %arg7[%c0_12, %c0_13, %c0_14] : memref<1x64x32xf32, #tpu.memory_space<vmem>>, vector<1x64x32xf32>
    %24 = vector.shape_cast %23 : vector<1x64x32xf32> to vector<64x32xf32>
    %25 = vector.shape_cast %22 : vector<64x32xf32> to vector<1x64x32xf32>
    tpu.vector_store %arg7[%c0_12, %c0_13, %c0_14], %25 {strides = array<i32>} : memref<1x64x32xf32, #tpu.memory_space<vmem>>, vector<1x64x32xf32>,
    return
  }
  func.func @transform_0(%arg0: i32, %arg1: i32) -> (i32, i32, i32) {
    %c0_i32 = arith.constant 0 : i32
    %c0_i32_0 = arith.constant 0 : i32
    %c0_i32_1 = arith.constant 0 : i32
    return %arg0, %c0_i32, %c0_i32_0 : i32, i32, i32
  }
  func.func @transform_1(%arg0: i32, %arg1: i32) -> (i32, i32, i32) {
    %c0_i32 = arith.constant 0 : i32
    %c0_i32_0 = arith.constant 0 : i32
    return %arg0, %arg1, %c0_i32 : i32, i32, i32
  }
  func.func @transform_2(%arg0: i32, %arg1: i32) -> (i32, i32) {
    %c0_i32 = arith.constant 0 : i32
    %c0_i32_0 = arith.constant 0 : i32
    %c0_i32_1 = arith.constant 0 : i32
    return %c0_i32, %c0_i32_0 : i32, i32
  }
  func.func @transform_3(%arg0: i32, %arg1: i32) -> (i32, i32) {
    %c0_i32 = arith.constant 0 : i32
    %c0_i32_0 = arith.constant 0 : i32
    %c0_i32_1 = arith.constant 0 : i32
    return %c0_i32, %c0_i32_0 : i32, i32
  }
  func.func @transform_4(%arg0: i32, %arg1: i32) -> (i32, i32) {
    %c0_i32 = arith.constant 0 : i32
    %c0_i32_0 = arith.constant 0 : i32
    %c0_i32_1 = arith.constant 0 : i32
    return %c0_i32, %c0_i32_0 : i32, i32
  }
  func.func @transform_5(%arg0: i32, %arg1: i32) -> (i32, i32, i32) {
    %c0_i32 = arith.constant 0 : i32
    %c0_i32_0 = arith.constant 0 : i32
    return %arg0, %arg1, %c0_i32 : i32, i32, i32
  }
}

</mosaic_0001>

<bundles_post_ra>
// kernel: tpu_custom_call.1
= control target key start
LH: loop header
LB: loop body
LE: loop exit
PB: predicated region body
PF: predicated region fallthrough
CT: control target
= control target key end

     0   :  { %s915_s18 = smov 0   ;;  %s917_s19 = smov 0   ;;  %s1003_s0 = inlined_call_operand.vmem [shape: f32[2,8,32], index: 0, kind: input, shape index: {}]   ;;  %s1004_s1 = inlined_call_operand.vmem [shape: f32[2,64,32], index: 1, kind: input, shape index: {}]   ;;  %s1005_s2 = inlined_call_operand.vmem [shape: f32[32,64], index: 2, kind: input, shape index: {}]   ;;  %s1006_s3 = inlined_call_operand.vmem [shape: f32[32,32], index: 3, kind: input, shape index: {}]   ;;  %s1007_s4 = inlined_call_operand.vmem [shape: f32[1,32], index: 4, kind: input, shape index: {}]   ;;  %s1008_s5 = inlined_call_operand.vmem [shape: f32[2,64,32], index: 5, kind: output, shape index: {}]  }
   0x1   :  { %s919_s20 = smov 0  }
   0x2 LB: > { %s27_s21 = sadd.s32 1, %s874_s19  ;;  %p741_p0 = scmp.ge.s32.totalorder %s878_s20, 1  ;;  %s878_s20 = sphi %s919_s20, %s15_s20   ;;  %s874_s19 = sphi %s917_s19, %s1010_s19   ;;  %s870_s18 = sphi %s915_s18, %s1009_s18  }
   0x3   : > { %p29_p1 = scmp.ge.s32.totalorder %s27_s21, 2  ;;  %p217_p2 = scmp.lt.s32.totalorder %s878_s20, 3 }
   0x5   : > { %s1012_s21 = smov (%p29_p1, %s27_s21), 0  ;;  %p218_p3 = pnand %p741_p0, %p217_p2 }
   0x6   : > { %v290_v0 = vld [vmem:[%s1005_s2] sm:$0xff] (!%p218_p3)  ;;  %v291_v1 = vld [vmem:[%s1005_s2 + $0x8] sm:$0xff] (!%p218_p3)  ;;  %v880_v3 = vmov (!%p218_p3), 0.0|0.0   ;;  %v292_v6 = vld [vmem:[%s1005_s2 + $0x10] sm:$0xff] (!%p218_p3)  ;;  %vm881_vm0 = vmmov (!%p218_p3), 0   ;;  %v882_v8 = vmov (!%p218_p3), 0.0   ;;  %v377_v25 = vlaneseq (!%p218_p3) }
   0x7   : > { %221 = sbr.rel (%p218_p3) target bundleno = 370 (0x172), region = 40  ;;  %v368_v2 = vld [vmem:[%s1006_s3] sm:$0xff] (!%p218_p3)  ;;  %809 = vmatprep.subr.bf16.mxu0 (!%p218_p3), %v880_v3  ;;  %v810_v4 = vpack.c.bf16 (!%p218_p3), %v291_v1, %v290_v0  ;;  %v369_v5 = vld [vmem:[%s1006_s3 + $0x8] sm:$0xff] (!%p218_p3)  ;;  %v293_v7 = vld [vmem:[%s1005_s2 + $0x18] sm:$0xff] (!%p218_p3)  ;;  %786 = vmatprep.mubr.msk.f32.mxu0 (!%p218_p3), %vm881_vm0, %v882_v8  ;;  %p257_p4 = scmp.lt.s32.totalorder (!%p218_p3), %s870_s18, 1  ;;  %vm294_vm1 = vcmask (!%p218_p3), 261120  }
   0x8   : > { %v815_v9 = vpack.c.bf16 (!%p218_p3), %v369_v5, %v368_v2  ;;  %v370_v10 = vld [vmem:[%s1006_s3 + $0x10] sm:$0xff] (!%p218_p3)  ;;  %v371_v11 = vld [vmem:[%s1006_s3 + $0x18] sm:$0xff] (!%p218_p3)  ;;  %v813_v12 = vpack.c.bf16 (!%p218_p3), %v293_v7, %v292_v6  ;;  %v883_v23 = vmov (!%p218_p3), 1966171168   ;;  %v378_v27 = vshrl.u32 (!%p218_p3), %v377_v25, 7  ;;  %s884_s25 = smov (!%p218_p3), 96  }
   0x9   : > { %811 = vmatpush3.bf16.msra.mxu0 (!%p218_p3), %v810_v4  ;;  %v819_v13 = vpack.c.bf16 (!%p218_p3), %v371_v11, %v370_v10  ;;  %v375_v24 = vunpack.c.l.s4 (!%p218_p3), %v883_v23  ;;  %v756_v5 = vld [vmem:[%s1007_s4] ss:$0 sm:$0xff] (!%p218_p3) }
   0xa   : > { %823 = vmatprep.subr.bf16.mxu1 (!%p218_p3), %v815_v9  ;;  %812 = vmatprep.subr.bf16.mxu0 (!%p218_p3), %v880_v3  ;;  %v424_v32 = vsub.s32 (!%p218_p3), 0, %v378_v27 }
   0xb   : > { %825 = vmatpush3.bf16.msra.mxu1 (!%p218_p3), %v815_v9  ;;  %v376_v26 = vunpack.c.0.s8 (!%p218_p3), %v375_v24 }
   0xc   : > { %824 = vmatprep.subr.bf16.mxu1 (!%p218_p3), %v819_v13 }
   0xd   : > { %814 = vmatpush3.bf16.msra.mxu0 (!%p218_p3), %v813_v12  ;;  %v379_v28 = vsub.s32 (!%p218_p3), %v376_v26, %v378_v27 }
   0xe   : > { %s1014_s18 = smov (!%p257_p4, %s870_s18), 1  ;;  %816 = vmatprep.subr.bf16.mxu0 %v815_v9 }
   0xf   : > { %s742_s13 = sshll.u32 %s1014_s18, 3  ;;  %s759_s14 = sshll.u32 %s1014_s18, 6  ;;  %826 = vmatpush3.bf16.msra.mxu1 %v819_v13 }
  0x10   : > { %s260_s17 = scalar_lea.vmem %s1003_s0, %s742_s13  ;;  %s269_s24 = scalar_lea.vmem %s1004_s1, %s759_s14 }
  0x11   : > { %v281_v14 = vld [vmem:[%s260_s17] sm:$0xff]  ;;  %v284_v15 = vld [vmem:[%s269_s24 + $0x10] sm:$0xff]  ;;  %v285_v17 = vld [vmem:[%s269_s24 + $0x18] sm:$0xff]  ;;  %s279_s30 = scalar_lea.vmem %s1008_s5, %s759_s14 }
  0x12   : > { %800 = vmatprep.mubr.msk.f32.mxu1 %vm294_vm1, %v284_v15  ;;  %v282_v16 = vld [vmem:[%s269_s24] sm:$0xff]  ;;  %787 = vmatmul.mubr.msk.f32.vlgmr.msra.gmra.mrb[0].mxu0 %vm294_vm1, %v281_v14  ;;  %v287_v19 = vld [vmem:[%s269_s24 + $0x28] sm:$0xff]  ;;  %v288_v20 = vld [vmem:[%s269_s24 + $0x30] sm:$0xff] }
  0x13   : > { %v286_v18 = vld [vmem:[%s269_s24 + $0x20] sm:$0xff]  ;;  %818 = vmatpush3.bf16.msra.mxu0 %v815_v9  ;;  %797 = vmatprep.mubr.msk.f32.mxu0 %vm294_vm1, %v282_v16  ;;  %v283_v21 = vld [vmem:[%s269_s24 + $0x8] sm:$0xff]  ;;  %v289_v22 = vld [vmem:[%s269_s24 + $0x38] sm:$0xff] }
  0x14   : > { %801 = vmatmul.mubr.msk.f32.vlgmr.msra.gmra.mrb[0].mxu1 %vm294_vm1, %v285_v17  ;;  %820 = vmatprep.subr.bf16.mxu0 %v819_v13 }
  0x15   : > { %803 = vmatprep.mubr.msk.f32.mxu1 %vm294_vm1, %v286_v18 }
  0x17   : > { %822 = vmatpush3.bf16.msra.mxu0 %v819_v13 }
  0x18   : > { %804 = vmatmul.mubr.msk.f32.gmra.mrb[2].mxu1 %vm294_vm1, %v287_v19 }
  0x19   : > { %806 = vmatprep.mubr.msk.f32.mxu1 %vm294_vm1, %v288_v20 }
  0x1a   : > { %798 = vmatmul.mubr.msk.f32.vlgmr.msra.gmra.mrb[2].mxu0 %vm294_vm1, %v283_v21 }
  0x1c   : > { %807 = vmatmul.mubr.msk.f32.gmra.mrb[4].mxu1 %vm294_vm1, %v289_v22 }
  0xe5   : > { %v364_v29 = vpop.f32.mrb[0].mxu0 }
  0xe6   : > { %v788_v30 = vpop.f32.mrb[1].mxu0  ;;  %v380_v31 = vrot.slane %v364_v29, %v379_v28  ;;  %v373_v33 = vcombine.high %v364_v29, %v364_v29 }
  0xe7   : > { %v802_v34 = vpop.f32.mrb[0].mxu1 }
  0xe8   : > { %v560_v35 = vadd.f32 %v802_v34, %v364_v29  ;;  %v554_v36 = vpop.f32.mrb[1].mxu1  ;;  %v396_v37 = vrot.slane %v380_v31, %v379_v28  ;;  %v388_v38 = vcombine.high %v380_v31, %v380_v31  ;;  %v387_v39 = vrot.slane %v373_v33, %v379_v28 }
  0xe9   : > { %v555_v40 = vadd.f32 %v554_v36, %v364_v29 }
  0xea   : > { %v425_v41 = vrot.slane %v396_v37, %v424_v32  ;;  %v418_v42 = vcombine.high %v396_v37, %v396_v37  ;;  %v410_v43 = vrot.slane %v388_v38, %v379_v28  ;;  %v389_v49 = vcombine.high %v387_v39, %v387_v39 }
  0xeb   : > { %v805_v44 = vpop.f32.mrb[2].mxu1  ;;  %v403_v55 = vrot.slane %v387_v39, %v379_v28 }
  0xec   : > { %v570_v45 = vadd.f32 %v805_v44, %v364_v29  ;;  %v564_v46 = vpop.f32.mrb[3].mxu1  ;;  %583 = vrot.lane.b32.xlu0 %v425_v41, %s884_s25  ;;  %v433_v47 = vrot.slane %v418_v42, %v424_v32  ;;  %v420_v48 = vcombine.high %v410_v43, %v410_v43  ;;  %v429_v54 = vrot.slane %v410_v43, %v424_v32 }
  0xed   : > { %v565_v50 = vadd.f32 %v564_v46, %v364_v29  ;;  %v799_v51 = vpop.f32.mrb[2].mxu0  ;;  %v417_v61 = vrot.slane %v389_v49, %v379_v28  ;;  %v441_v63 = vrot.slane %v403_v55, %v424_v32  ;;  %v419_v0 = vcombine.high %v403_v55, %v403_v55 }
  0xee   : > { %v550_v52 = vadd.f32 %v799_v51, %v364_v29  ;;  %587 = vrot.lane.b32.xlu1 %v433_v47, %s884_s25  ;;  %v544_v53 = vpop.f32.mrb[3].mxu0  ;;  %v437_v60 = vrot.slane %v420_v48, %v424_v32 }
  0xef   : > { %v808_v56 = vpop.f32.mrb[4].mxu1  ;;  %v545_v57 = vadd.f32 %v544_v53, %v364_v29  ;;  %v445_v1 = vrot.slane %v417_v61, %v424_v32  ;;  %v421_v2 = vcombine.high %v417_v61, %v417_v61  ;;  %v449_v3 = vrot.slane %v419_v0, %v424_v32 }
  0xf0   : > { %v580_v58 = vadd.f32 %v808_v56, %v364_v29  ;;  %v574_v59 = vpop.f32.mrb[5].mxu1  ;;  %585 = vrot.lane.b32.xlu0 %v429_v54, %s884_s25 }
  0xf1   : > { %v575_v62 = vadd.f32 %v574_v59, %v364_v29  ;;  %v453_v4 = vrot.slane %v421_v2, %v424_v32 }
  0xf2   : > { %589 = vrot.lane.b32.xlu1 %v437_v60, %s884_s25 }
  0xf4   : > { %591 = vrot.lane.b32.xlu0 %v441_v63, %s884_s25 }
  0xf6   : > { %593 = vrot.lane.b32.xlu1 %v445_v1, %s884_s25 }
  0xf8   : > { %595 = vrot.lane.b32.xlu0 %v449_v3, %s884_s25 }
  0xfa   : > { %597 = vrot.lane.b32.xlu1 %v453_v4, %s884_s25 }
 0x15e   : > { %v584_v6 = vpop.permute.xlu0 %583 }
 0x15f   : > { %v607_v7 = vadd.f32 %v584_v6, %v545_v57 }
 0x160   : > { %v588_v8 = vpop.permute.xlu1 %587 }
 0x161   : > { %v622_v9 = vadd.f32 %v756_v5, %v607_v7  ;;  %v609_v10 = vadd.f32 %v588_v8, %v555_v40 }
 0x162   : > { %v586_v11 = vpop.permute.xlu0 %585 }
 0x163   : > { %630 = vst.msk [vmem:[%s279_s30] sm:$0xff] %vm294_vm1, %v622_v9  ;;  %v624_v12 = vadd.f32 %v756_v5, %v609_v10  ;;  %v608_v13 = vadd.f32 %v586_v11, %v550_v52 }
 0x164   : > { %v590_v14 = vpop.permute.xlu1 %589 }
 0x165   : > { %632 = vst.msk [vmem:[%s279_s30 + $0x10] sm:$0xff] %vm294_vm1, %v624_v12  ;;  %v623_v15 = vadd.f32 %v756_v5, %v608_v13  ;;  %v610_v16 = vadd.f32 %v590_v14, %v560_v35 }
 0x166   : > { %v592_v17 = vpop.permute.xlu0 %591 }
 0x167   : > { %631 = vst.msk [vmem:[%s279_s30 + $0x8] sm:$0xff] %vm294_vm1, %v623_v15  ;;  %v625_v18 = vadd.f32 %v756_v5, %v610_v16  ;;  %v611_v19 = vadd.f32 %v592_v17, %v565_v50 }
 0x168   : > { %v594_v20 = vpop.permute.xlu1 %593 }
 0x169   : > { %633 = vst.msk [vmem:[%s279_s30 + $0x18] sm:$0xff] %vm294_vm1, %v625_v18  ;;  %v626_v21 = vadd.f32 %v756_v5, %v611_v19  ;;  %v612_v22 = vadd.f32 %v594_v20, %v570_v45 }
 0x16a   : > { %v596_v23 = vpop.permute.xlu0 %595 }
 0x16b   : > { %634 = vst.msk [vmem:[%s279_s30 + $0x20] sm:$0xff] %vm294_vm1, %v626_v21  ;;  %v627_v24 = vadd.f32 %v756_v5, %v612_v22  ;;  %v613_v25 = vadd.f32 %v596_v23, %v575_v62 }
 0x16c   : > { %v598_v26 = vpop.permute.xlu1 %597 }
 0x16d   : > { %635 = vst.msk [vmem:[%s279_s30 + $0x28] sm:$0xff] %vm294_vm1, %v627_v24  ;;  %v628_v27 = vadd.f32 %v756_v5, %v613_v25  ;;  %v614_v28 = vadd.f32 %v598_v26, %v580_v58 }
 0x16f   : > { %636 = vst.msk [vmem:[%s279_s30 + $0x30] sm:$0xff] %vm294_vm1, %v628_v27  ;;  %v629_v29 = vadd.f32 %v756_v5, %v614_v28 }
 0x171   : > { %637 = vst.msk [vmem:[%s279_s30 + $0x38] sm:$0xff] %vm294_vm1, %v629_v29 }
 0x172 PF: > { %s15_s20 = sadd.s32 1, %s878_s20   ;;  %s1009_s18 = smov %s874_s19 }
 0x173   : > { %p12_p5 = scmp.ge.s32.totalorder %s15_s20, 4   ;;  %s1010_s19 = smov %s1012_s21 }
 0x175   :  { %14 = sbr.rel (!%p12_p5) target bundleno = 2 (0x2), region = 73 }

</bundles_post_ra>
